<compile_context>
chip_gen: v7x
topology: tpu7x:2x2x1
jax: 0.10.0
libtpu: 0.0.40
codegen_flags: <defaults>
</compile_context>

<pallas_src>
import functools

import jax
import jax.numpy as jnp
from jax import lax
from jax.experimental import pallas as pl
from jax.experimental.pallas import tpu as pltpu


# ----------------------------------------------------------------------------
# Kernel 1: dense layer, tiled over rows.  Wt is already transposed: (K, Nout).
# ----------------------------------------------------------------------------
def _linear_nobias_kernel(x_ref, wt_ref, o_ref):
    acc = jnp.dot(x_ref[...], wt_ref[...], preferred_element_type=jnp.float32)
    o_ref[...] = acc.astype(o_ref.dtype)


def _linear_bias_kernel(x_ref, wt_ref, b_ref, o_ref):
    acc = jnp.dot(x_ref[...], wt_ref[...], preferred_element_type=jnp.float32)
    o_ref[...] = (acc + b_ref[...]).astype(o_ref.dtype)


def linear_pallas(x2d, w_t, bias_row=None, *, tile_m=256):
    """x2d: (M, K), w_t: (K, Nout), optional bias_row: (1, Nout)."""
    M, K = x2d.shape
    Nout = w_t.shape[1]
    # Row tile: full M for small problems, else 256-row tiles (8-aligned) so
    # the activation/output stream is pipelined HBM<->VMEM while the weight
    # stays resident across the grid.
    tm = M if M <= tile_m else tile_m
    grid = (pl.cdiv(M, tm),)

    flops = 2 * M * K * Nout
    bytes_accessed = 4 * (M * K + K * Nout + M * Nout)

    if bias_row is None:
        kernel = _linear_nobias_kernel
        in_specs = [
            pl.BlockSpec((tm, K), lambda i: (i, 0)),
            pl.BlockSpec((K, Nout), lambda i: (0, 0)),
        ]
        args = (x2d, w_t)
    else:
        kernel = _linear_bias_kernel
        in_specs = [
            pl.BlockSpec((tm, K), lambda i: (i, 0)),
            pl.BlockSpec((K, Nout), lambda i: (0, 0)),
            pl.BlockSpec((1, Nout), lambda i: (0, 0)),
        ]
        args = (x2d, w_t, bias_row)
        bytes_accessed += 4 * Nout

    return pl.pallas_call(
        kernel,
        out_shape=jax.ShapeDtypeStruct((M, Nout), x2d.dtype),
        grid_spec=pltpu.PrefetchScalarGridSpec(
            num_scalar_prefetch=0,
            grid=grid,
            in_specs=in_specs,
            out_specs=pl.BlockSpec((tm, Nout), lambda i: (i, 0)),
        ),
        compiler_params=pltpu.CompilerParams(
            dimension_semantics=("parallel",)
        ),
        cost_estimate=pl.CostEstimate(
            flops=flops, transcendentals=0, bytes_accessed=bytes_accessed
        ),
    )(*args)


# ----------------------------------------------------------------------------
# Kernel 2: per-batch attention over all heads.
#   inputs  q/k/v : (B, H, N, Dh)  -> block (1, H, N, Dh)
#   output  o     : (B, N, H*Dh)   -> block (1, N, H*Dh)   (lane-dense store)
# ----------------------------------------------------------------------------
def _attention_kernel(q_ref, k_ref, v_ref, o_ref, *, scale, heads):
    outs = []
    for h in range(heads):  # static unroll, heads is small
        q = q_ref[0, h].astype(jnp.float32)          # (N, Dh)
        k = k_ref[0, h].astype(jnp.float32)          # (N, Dh)
        v = v_ref[0, h].astype(jnp.float32)          # (N, Dh)
        # q @ k^T without materializing k.T (trans-B contraction on the MXU).
        sim = lax.dot_general(
            q, k, (((1,), (1,)), ((), ())),
            preferred_element_type=jnp.float32,
        ) * scale                                     # (N, N)
        sim = sim - jnp.max(sim, axis=-1, keepdims=True)
        p = jnp.exp(sim)
        denom = jnp.sum(p, axis=-1, keepdims=True)
        p = p * pl.reciprocal(denom, approx=True)     # EUP slot, ~free
        out_h = lax.dot_general(
            p, v, (((1,), (0,)), ((), ())),
            preferred_element_type=jnp.float32,
        )                                             # (N, Dh)
        outs.append(out_h)
    # Single lane-dense store of width H*Dh (= inner), already 'n (h d)'.
    o_ref[0] = jnp.concatenate(outs, axis=-1).astype(o_ref.dtype)


def attention_core_pallas(q, k, v, scale):
    """q, k, v: (B, H, N, Dh) -> (B, N, H*Dh)  (already 'b n (h d)')."""
    B, H, N, Dh = q.shape
    inner = H * Dh
    kern = functools.partial(_attention_kernel, scale=scale, heads=H)
    in_spec = pl.BlockSpec((1, H, N, Dh), lambda b: (b, 0, 0, 0))
    out_spec = pl.BlockSpec((1, N, inner), lambda b: (b, 0, 0))
    return pl.pallas_call(
        kern,
        out_shape=jax.ShapeDtypeStruct((B, N, inner), q.dtype),
        grid_spec=pltpu.PrefetchScalarGridSpec(
            num_scalar_prefetch=0,
            grid=(B,),
            in_specs=[in_spec, in_spec, in_spec],
            out_specs=out_spec,
        ),
        compiler_params=pltpu.CompilerParams(
            dimension_semantics=("parallel",)
        ),
        cost_estimate=pl.CostEstimate(
            flops=4 * B * H * N * N * Dh,
            transcendentals=B * H * N * N,
            bytes_accessed=4 * (3 * B * H * N * Dh + B * N * inner),
        ),
    )(q, k, v)


# ----------------------------------------------------------------------------
# Full module forward (glue in plain JAX, hot path in Pallas)
# ----------------------------------------------------------------------------
def attention_forward(x, params, heads):
    B, N, Dq = x.shape
    Wq = params["to_q_w"]      # (inner, Dq)    -- PyTorch nn.Linear layout
    Wkv = params["to_kv_w"]    # (2*inner, Dq)
    Wo = params["to_out_w"]    # (Dq, inner)
    bo = params["to_out_b"]    # (Dq,)
    inner = Wq.shape[0]
    dim_head = inner // heads
    scale = float(dim_head) ** (-0.5)

    x2 = x.reshape(B * N, Dq)

    # Fused QKV projection: one pallas_call, no zero-bias arrays.
    w_qkv_t = jnp.concatenate([Wq, Wkv], axis=0).T       # (Dq, 3*inner)
    qkv = linear_pallas(x2, w_qkv_t)                     # (B*N, 3*inner)
    q = qkv[:, :inner]
    k = qkv[:, inner:2 * inner]
    v = qkv[:, 2 * inner:]

    def split_heads(t):  # 'b n (h d) -> b h n d'
        return t.reshape(B, N, heads, dim_head).transpose(0, 2, 1, 3)

    qh, kh, vh = map(split_heads, (q, k, v))

    # Per-batch attention over all heads; output already 'b n (h d)'.
    out = attention_core_pallas(qh, kh, vh, scale)       # (B, N, inner)

    y = linear_pallas(out.reshape(B * N, inner), Wo.T, bo.reshape(1, -1))
    return y.reshape(B, N, Dq)


# ----------------------------------------------------------------------------
# Pure-JAX reference for a sanity check
# ----------------------------------------------------------------------------
def attention_reference(x, params, heads):
    B, N, Dq = x.shape
    Wq, Wkv = params["to_q_w"], params["to_kv_w"]
    Wo, bo = params["to_out_w"], params["to_out_b"]
    inner = Wq.shape[0]
    dh = inner // heads
    scale = float(dh) ** (-0.5)
    q = x @ Wq.T
    kv = x @ Wkv.T
    k, v = kv[..., :inner], kv[..., inner:]

    def sh(t):
        return t.reshape(B, N, heads, dh).transpose(0, 2, 1, 3).reshape(B * heads, N, dh)

    q, k, v = map(sh, (q, k, v))
    sim = jnp.einsum("bid,bjd->bij", q, k) * scale
    attn = jax.nn.softmax(sim, axis=-1)
    out = jnp.einsum("bij,bjd->bid", attn, v)
    out = out.reshape(B, heads, N, dh).transpose(0, 2, 1, 3).reshape(B, N, inner)
    return out @ Wo.T + bo


if __name__ == "__main__":
    # Small shapes consistent with the module's forward.
    B, N, query_dim = 2, 8, 32
    heads, dim_head = 2, 16
    inner_dim = heads * dim_head

    key = jax.random.PRNGKey(0)
    kx, kq, kkv, kow, kob = jax.random.split(key, 5)

    x = jax.random.normal(kx, (B, N, query_dim), dtype=jnp.float32)
    params = {
        "to_q_w": jax.random.normal(kq, (inner_dim, query_dim), jnp.float32) * 0.05,
        "to_kv_w": jax.random.normal(kkv, (2 * inner_dim, query_dim), jnp.float32) * 0.05,
        "to_out_w": jax.random.normal(kow, (query_dim, inner_dim), jnp.float32) * 0.05,
        "to_out_b": jax.random.normal(kob, (query_dim,), jnp.float32) * 0.05,
    }

    y = attention_forward(x, params, heads)
    y = jax.block_until_ready(y)

    y_ref = attention_reference(x, params, heads)
    assert y.shape == (B, N, query_dim)
    # approx reciprocal in the softmax -> slightly looser tolerance than exact.
    assert jnp.allclose(y, y_ref, atol=1e-3, rtol=1e-3), "mismatch vs reference"

    print("KERNEL_OK")
</pallas_src>

<mosaic_0001>
module attributes {stable_mosaic.version = 11 : i64} {
  func.func @_linear_nobias_kernel(%arg0: i32, %arg1: memref<16x32xf32, #tpu.memory_space<vmem>>, %arg2: memref<32x96xf32, #tpu.memory_space<vmem>>, %arg3: memref<16x96xf32, #tpu.memory_space<vmem>>) attributes {dimension_semantics = [#tpu.dimension_semantics<parallel>], iteration_bounds = array<i64: 1>, scalar_prefetch = 0 : i64, scratch_operands = 0 : i64, tpu.core_type = #tpu.core_type<tc>, window_params = [{transform_indices = @transform_0, window_bounds = array<i64: 16, 32>}, {pipeline_mode = #tpu.pipeline_mode<synchronous>, transform_indices = @transform_1, window_bounds = array<i64: 32, 96>}, {transform_indices = @transform_2, window_bounds = array<i64: 16, 96>}]} {
    %c0 = arith.constant 0 : index
    %c0_0 = arith.constant 0 : index
    %0 = vector.load %arg1[%c0, %c0_0] : memref<16x32xf32, #tpu.memory_space<vmem>>, vector<16x32xf32>
    %c0_1 = arith.constant 0 : index
    %c0_2 = arith.constant 0 : index
    %1 = vector.load %arg2[%c0_1, %c0_2] : memref<32x96xf32, #tpu.memory_space<vmem>>, vector<32x96xf32>
    %cst = arith.constant dense<0.000000e+00> : vector<16x96xf32>
    %2 = tpu.matmul %0, %1, %cst {dimension_numbers = #tpu.dot_dimension_numbers<[1], [0], [0], [1], [0, 0, 1, 1], [], []>} : vector<16x32xf32>, vector<32x96xf32>, vector<16x96xf32> -> vector<16x96xf32>
    %c0_3 = arith.constant 0 : index
    %c0_4 = arith.constant 0 : index
    %3 = vector.load %arg3[%c0_3, %c0_4] : memref<16x96xf32, #tpu.memory_space<vmem>>, vector<16x96xf32>
    tpu.vector_store %arg3[%c0_3, %c0_4], %2 {strides = array<i32>} : memref<16x96xf32, #tpu.memory_space<vmem>>, vector<16x96xf32>,
    return
  }
  func.func @transform_0(%arg0: i32) -> (i32, i32) {
    %c0_i32 = arith.constant 0 : i32
    %c0_i32_0 = arith.constant 0 : i32
    return %arg0, %c0_i32 : i32, i32
  }
  func.func @transform_1(%arg0: i32) -> (i32, i32) {
    %c0_i32 = arith.constant 0 : i32
    %c0_i32_0 = arith.constant 0 : i32
    %c0_i32_1 = arith.constant 0 : i32
    return %c0_i32, %c0_i32_0 : i32, i32
  }
  func.func @transform_2(%arg0: i32) -> (i32, i32) {
    %c0_i32 = arith.constant 0 : i32
    %c0_i32_0 = arith.constant 0 : i32
    return %arg0, %c0_i32 : i32, i32
  }
}

</mosaic_0001>

<bundles_post_ra>
// kernel: tpu_custom_call.1
= control target key start
LH: loop header
LB: loop body
LE: loop exit
PB: predicated region body
PF: predicated region fallthrough
CT: control target
= control target key end

     0   :  { %7 = vsyncpa [#allocation3], 0  ;;  %s318_s0 = inlined_call_operand.hbm [shape: f32[16,32], index: 0, kind: input, shape index: {}]   ;;  %s319_s1 = inlined_call_operand.hbm [shape: f32[32,96], index: 1, kind: input, shape index: {}]   ;;  %s320_s2 = inlined_call_operand.hbm [shape: f32[16,96], index: 2, kind: output, shape index: {}]  }
   0x1   :  { %8 = vsyncpa [#allocation6], 0 }
   0x2   :  { %9 = vsyncpa [#allocation4], 0  ;;  %s253_s9 = smov [#allocation2]   ;;  %s181_s13 = scalar_lea.hbm %s318_s0, 256 }
   0x3   :  { %s15_s10 = sshll.u32 %s253_s9, 4  ;;  %p182_p0 = scmp.ne.s32.totalorder %s318_s0, %s181_s13  ;;  %s16_s10 = int_to_ptr.vmem [resolvable:$true] %s15_s10 }
   0x4   :  { %p185_p1 = scmp.lt.u32.totalorder %s181_s13, %s318_s0 }
   0x6   :  { %p187_p2 = pnand %p185_p1, %p182_p0 }
   0x8   :  { %190 = shalt.err (!%p187_p2)
}
   0x9   :  { %s191_s18 = scalar_lea.vmem %s16_s10, 256  ;;  %p196_p4 = scmp.lt.s32.totalorder %s16_s10, %s16_s10 }
   0xa   :  { %p192_p3 = scmp.ne.s32.totalorder %s16_s10, %s191_s18  ;;  %p197_p5 = scmp.lt.s32.totalorder %s191_s18, %s191_s18 }
   0xc   :  { %p198_p6 = por %p197_p5, %p196_p4 }
   0xe   :  { %p199_p7 = pnand %p198_p6, %p192_p3 }
  0x10   :  { %202 = shalt.err (!%p199_p7)
}
  0x11   :  { %s254_s19 = smov 128   ;;  %s255_s20 = smov 8  }
  0x12   :  { %21 = dma.hbm_to_vmem [thread:$0]  %s318_s0, 256, %s16_s10, [#allocation3], %s254_s19, %s254_s19, %s255_s20  }
  0x13   :  { %s256_s23 = smov [#allocation5]   ;;  %s203_s27 = scalar_lea.hbm %s319_s1, 512 }
  0x14   :  { %s27_s24 = sshll.u32 %s256_s23, 4  ;;  %p204_p8 = scmp.ne.s32.totalorder %s319_s1, %s203_s27  ;;  %s28_s24 = int_to_ptr.vmem [resolvable:$true] %s27_s24 }
  0x15   :  { %p207_p9 = scmp.lt.u32.totalorder %s203_s27, %s319_s1 }
  0x17   :  { %p209_p10 = pnand %p207_p9, %p204_p8 }
  0x19   :  { %212 = shalt.err (!%p209_p10)
}
  0x1a   :  { %s213_s4 = scalar_lea.vmem %s28_s24, 512  ;;  %p218_p12 = scmp.lt.s32.totalorder %s28_s24, %s28_s24 }
  0x1b   :  { %p214_p11 = scmp.ne.s32.totalorder %s28_s24, %s213_s4  ;;  %p219_p13 = scmp.lt.s32.totalorder %s213_s4, %s213_s4 }
  0x1d   :  { %p220_p0 = por %p219_p13, %p218_p12 }
  0x1f   :  { %p221_p1 = pnand %p220_p0, %p214_p11 }
  0x21   :  { %224 = shalt.err (!%p221_p1)
}
  0x22   :  { %33 = dma.hbm_to_vmem [thread:$0]  %s319_s1, 512, %s28_s24, [#allocation6], %s254_s19, %s254_s19, %s255_s20  }
  0x23   :  { %247 = dma.done.wait [#allocation3], 256  }
  0x24   :  { %248 = vsyncadd [#allocation3], 4294967040 }
  0x25   :  { %249 = dma.done.wait [#allocation6], 512  }
  0x26   :  { %250 = vsyncadd [#allocation6], 4294966784  ;;  %vm46_vm0 = vcmask 261120   ;;  %v42_v0 = vld [vmem:[#allocation5] sm:$0xff]  ;;  %v43_v1 = vld [vmem:[#allocation5 + $0x8] sm:$0xff]  ;;  %s257_s1 = smov [#allocation7]  }
  0x27   :  { %v44_v2 = vld [vmem:[#allocation5 + $0x10] sm:$0xff]  ;;  %v168_v3 = vpack.c.bf16 %v43_v1, %v42_v0  ;;  %v45_v4 = vld [vmem:[#allocation5 + $0x18] sm:$0xff]  ;;  %s136_s6 = sshll.u32 %s257_s1, 4  ;;  %vm128_vm1 = vcmask 785408   ;;  %s137_s6 = int_to_ptr.vmem [resolvable:$true] %s136_s6 }
  0x28   :  { %v40_v5 = vld [vmem:[#allocation2] sm:$0xff]  ;;  %v172_v6 = vpack.c.bf16 %v45_v4, %v44_v2  ;;  %v41_v7 = vld [vmem:[#allocation2 + $0x8] sm:$0xff]  ;;  %s225_s7 = scalar_lea.vmem %s137_s6, 256  ;;  %p230_p3 = scmp.lt.s32.totalorder %s137_s6, %s137_s6 }
  0x29   :  { %165 = vmatprep.mubr.msk.f32.mxu0 %vm46_vm0, %v40_v5  ;;  %169 = vmatprep.subr.bf16.mxu0 %v168_v3  ;;  %p226_p2 = scmp.ne.s32.totalorder %s137_s6, %s225_s7  ;;  %p231_p4 = scmp.lt.s32.totalorder %s225_s7, %s225_s7 }
  0x2a   :  { %171 = vmatpush3.bf16.msra.mxu0 %v168_v3 }
  0x2b   :  { %173 = vmatprep.subr.bf16.mxu0 %v172_v6  ;;  %p232_p5 = por %p231_p4, %p230_p3 }
  0x2d   :  { %p233_p6 = pnand %p232_p5, %p226_p2 }
  0x2e   :  { %175 = vmatpush3.bf16.msra.mxu0 %v172_v6 }
  0x31   :  { %166 = vmatmul.mubr.msk.f32.vlgmr.msra.gmra.mrb[0].mxu0 %vm46_vm0, %v41_v7 }
 0x104   :  { %v167_v8 = vpop.f32.mrb[0].mxu0 }
 0x105   :  { %130 = vst.msk [vmem:[#allocation7 + $0x8] sm:$0xff] %vm128_vm1, %v167_v8  ;;  %v119_v9 = vpop.f32.mrb[1].mxu0 }
 0x106   :  { %129 = vst.msk [vmem:[#allocation7] sm:$0xff] %vm128_vm1, %v119_v9 }
 0x107   :  { %236 = shalt.err (!%p233_p6)
}
 0x108   :  { %s237_s10 = scalar_lea.hbm %s320_s2, 256 }
 0x109   :  { %p238_p7 = scmp.ne.s32.totalorder %s320_s2, %s237_s10  ;;  %p241_p8 = scmp.lt.u32.totalorder %s237_s10, %s320_s2 }
 0x10b   :  { %p243_p9 = pnand %p241_p8, %p238_p7 }
 0x10d   :  { %246 = shalt.err (!%p243_p9)
}
 0x10e   :  { %142 = dma.vmem_to_hbm [thread:$0]  %s137_s6, 256, %s320_s2, [#allocation4], %s254_s19, %s254_s19, %s255_s20  }
 0x10f   :  { %251 = dma.done.wait [#allocation4], 256  }
 0x110   :  { %252 = vsyncadd [#allocation4], 4294967040 }
 0x111   :  { %146 = vsyncpa [#allocation3], 1 }
 0x112   :  { %147 = vsyncpa [#allocation6], 1 }
 0x113   :  { %148 = vsyncpa [#allocation4], 1 }

</bundles_post_ra>
